<compile_context>
chip_gen: v6e
topology: v6e:2x2x1
jax: 0.10.0
libtpu: 0.0.40
codegen_flags: <defaults>
</compile_context>

<pallas_src>
import functools

import jax
import jax.numpy as jnp
from jax.experimental import pallas as pl
from jax.experimental.pallas import tpu as pltpu


def relu_flip_kernel(packed_ref, out_ref, *, S):
    # packed_ref: (S+2, P) f32, single VMEM operand:
    #   row 0      : x_full = [xh, flip(xh)]            (padded lanes = 1.0)
    #   rows 1..S  : w = scales^T * slopes, mirrored    (padded lanes = -1e9)
    #   row S+1    : d*d on valid lanes, 0 on padded lanes
    # out_ref: (1, P) lane-dense output; wrapper slices the first 2H lanes.
    x = packed_ref[0:1, :]                           # (1, P) static slice
    w = packed_ref[1:S + 1, :]                       # (S, P)
    dd = packed_ref[S + 1:S + 2, :]                  # (1, P)

    t = w * x                                        # (S, P) outer product (slopes pre-folded)

    # sigmoid(t) = 0.5*(tanh(t/2)+1): one EUP op, no divide, no inf transients.
    # Padded lanes: t = -1e9 -> tanh -> -1 -> z = 0 exactly.
    z = 0.5 * (jnp.tanh(0.5 * t) + 1.0)              # (S, P)

    y = jnp.sum(z, axis=0, keepdims=True) + dd       # (1, P); padded lanes stay 0

    # softmax(log(f)) == f / sum(f); padded lanes contribute 0 to the denom.
    denom = jnp.sum(y, axis=1, keepdims=True)        # (1, 1)
    inv = pl.reciprocal(denom, approx=True)          # EUP approximate reciprocal
    inv = inv * (2.0 - denom * inv)                  # one Newton step -> f32 accurate
    out_ref[...] = y * inv                           # single unmasked lane-dense store


@functools.partial(jax.jit, static_argnames=("element_size",))
def relu_flip_forward(x, scales, slopes, d, element_size):
    """x: (element_size,), scales: (H, S), slopes: (S,), d: scalar."""
    H = element_size // 2
    S = slopes.shape[0]
    two_h = 2 * H
    P = ((two_h + 127) // 128) * 128                 # lane-dense width (>= 128)
    pad = P - two_h

    xh = x[:H].astype(jnp.float32)                                   # (H,)
    x_full = jnp.concatenate([xh, xh[::-1]])                         # (2H,)
    x_row = jnp.pad(x_full, (0, pad), constant_values=1.0).reshape(1, P)

    # Fold slopes into scales: w[s, h] = scales[h, s] * slopes[s].
    w = scales.astype(jnp.float32).T * slopes.astype(jnp.float32)[:, None]   # (S, H)
    w_full = jnp.concatenate([w, w[:, ::-1]], axis=1)                # (S, 2H)
    w_rows = jnp.pad(w_full, ((0, 0), (0, pad)), constant_values=-1e9)

    dd = d.astype(jnp.float32) * d.astype(jnp.float32)               # d*d in wrapper
    dd_row = jnp.pad(jnp.broadcast_to(dd, (two_h,)).astype(jnp.float32),
                     (0, pad)).reshape(1, P)

    packed = jnp.concatenate([x_row, w_rows, dd_row], axis=0)        # (S+2, P)

    out = pl.pallas_call(
        functools.partial(relu_flip_kernel, S=S),
        out_shape=jax.ShapeDtypeStruct((1, P), jnp.float32),
        in_specs=[pl.BlockSpec(memory_space=pltpu.MemorySpace.VMEM)],
        out_specs=pl.BlockSpec(memory_space=pltpu.MemorySpace.VMEM),
        cost_estimate=pl.CostEstimate(
            flops=4 * S * P + 6 * P,
            transcendentals=S * P + 1,
            bytes_accessed=(S + 2) * P * 4 + P * 4,
        ),
    )(packed)
    return out[0, :two_h]


def relu_flip_reference(x, scales, slopes, d, element_size):
    """Pure-JAX reference mirroring the PyTorch forward."""
    H = element_size // 2
    xh = x[:H].astype(jnp.float32)
    t = jnp.tensordot(xh, slopes.astype(jnp.float32), 0)            # (H, S)
    t = scales.astype(jnp.float32) * t
    z = jax.nn.sigmoid(t)
    s = jnp.sum(z, axis=1) + d.astype(jnp.float32) * d.astype(jnp.float32)
    full = jnp.concatenate([s, jnp.flip(s, axis=0)])
    return jax.nn.softmax(jnp.log(full), axis=0)


if __name__ == "__main__":
    element_size = 16          # -> H = 8
    sig_num = 8
    H = element_size // 2

    key = jax.random.PRNGKey(0)
    kx, ks = jax.random.split(key)

    # Deterministic parameter init (random_init=True branch: scales is (H, S)).
    x = jax.random.uniform(kx, (element_size,), dtype=jnp.float32)
    scales = jax.random.uniform(ks, (H, sig_num), dtype=jnp.float32)
    slopes = jnp.full((sig_num,), 500.0, dtype=jnp.float32)
    d = jnp.asarray(10.0, dtype=jnp.float32)
    # TODO(synk): parameter `c` is defined in __init__ but unused in forward(); omitted.

    out = relu_flip_forward(x, scales, slopes, d, element_size)
    out = jax.block_until_ready(out)

    ref = relu_flip_reference(x, scales, slopes, d, element_size)
    assert out.shape == (element_size,)
    assert jnp.allclose(out, ref, rtol=1e-5, atol=1e-6), (out, ref)
    assert jnp.allclose(jnp.sum(out), 1.0, atol=1e-5)
    # Flip symmetry of the concatenated half is exact by construction.
    assert jnp.array_equal(out[H:], out[:H][::-1])

    print("KERNEL_OK")
</pallas_src>

<mosaic_0001>
module attributes {stable_mosaic.version = 11 : i64} {
  func.func @relu_flip_kernel(%arg0: memref<10x128xf32, #tpu.memory_space<vmem>>, %arg1: memref<1x128xf32, #tpu.memory_space<vmem>>) attributes {dimension_semantics = [], scalar_prefetch = 0 : i64, scratch_operands = 0 : i64, tpu.core_type = #tpu.core_type<tc>} {
    %c0 = arith.constant 0 : index
    %c0_0 = arith.constant 0 : index
    %0 = vector.load %arg0[%c0, %c0_0] : memref<10x128xf32, #tpu.memory_space<vmem>>, vector<1x128xf32>
    %c1 = arith.constant 1 : index
    %c0_1 = arith.constant 0 : index
    %1 = vector.load %arg0[%c1, %c0_1] : memref<10x128xf32, #tpu.memory_space<vmem>>, vector<8x128xf32>
    %c9 = arith.constant 9 : index
    %c0_2 = arith.constant 0 : index
    %2 = vector.load %arg0[%c9, %c0_2] : memref<10x128xf32, #tpu.memory_space<vmem>>, vector<1x128xf32>
    %3 = vector.broadcast %0 : vector<1x128xf32> to vector<8x128xf32>
    %4 = arith.mulf %1, %3 : vector<8x128xf32>
    %cst = arith.constant 5.000000e-01 : f32
    %5 = vector.broadcast %cst : f32 to vector<8x128xf32>
    %6 = arith.mulf %5, %4 : vector<8x128xf32>
    %7 = math.tanh %6 : vector<8x128xf32>
    %cst_3 = arith.constant 1.000000e+00 : f32
    %8 = vector.broadcast %cst_3 : f32 to vector<8x128xf32>
    %9 = arith.addf %7, %8 : vector<8x128xf32>
    %cst_4 = arith.constant 5.000000e-01 : f32
    %10 = vector.broadcast %cst_4 : f32 to vector<8x128xf32>
    %11 = arith.mulf %10, %9 : vector<8x128xf32>
    %cst_5 = arith.constant dense<0.000000e+00> : vector<128xf32>
    %12 = vector.multi_reduction <add>, %11, %cst_5 [0] : vector<8x128xf32> to vector<128xf32>
    %13 = vector.shape_cast %12 : vector<128xf32> to vector<1x128xf32>
    %14 = arith.addf %13, %2 : vector<1x128xf32>
    %cst_6 = arith.constant dense<0.000000e+00> : vector<1xf32>
    %15 = vector.multi_reduction <add>, %14, %cst_6 [1] : vector<1x128xf32> to vector<1xf32>
    %16 = vector.shape_cast %15 : vector<1xf32> to vector<1x1xf32>
    %17 = tpu.reciprocal %16 {approx = true} : vector<1x1xf32> -> vector<1x1xf32>
    %18 = arith.mulf %16, %17 : vector<1x1xf32>
    %cst_7 = arith.constant 2.000000e+00 : f32
    %19 = vector.broadcast %cst_7 : f32 to vector<1x1xf32>
    %20 = arith.subf %19, %18 : vector<1x1xf32>
    %21 = arith.mulf %17, %20 : vector<1x1xf32>
    %22 = vector.broadcast %21 : vector<1x1xf32> to vector<1x128xf32>
    %23 = arith.mulf %14, %22 : vector<1x128xf32>
    %c0_8 = arith.constant 0 : index
    %c0_9 = arith.constant 0 : index
    %24 = vector.load %arg1[%c0_8, %c0_9] : memref<1x128xf32, #tpu.memory_space<vmem>>, vector<1x128xf32>
    tpu.vector_store %arg1[%c0_8, %c0_9], %23 {strides = array<i32>} : memref<1x128xf32, #tpu.memory_space<vmem>>, vector<1x128xf32>,
    return
  }
}

</mosaic_0001>

<bundles_post_ra>
// kernel: relu_flip_forward.1
= control target key start
LH: loop header
LB: loop body
LE: loop exit
PB: predicated region body
PF: predicated region fallthrough
CT: control target
= control target key end

     0   :  { %vm27_vm0 = vcmask 1040384   ;;  %s68_s0 = inlined_call_operand.vmem [shape: f32[10,128], index: 0, kind: input, shape index: {}]   ;;  %s69_s1 = inlined_call_operand.vmem [shape: f32[1,128], index: 1, kind: output, shape index: {}]  }
   0x1   :  { %v41_v0 = vld [vmem:[%s68_s0] ss:$0 sm:$0xff]  ;;  %v9_v1 = vld [vmem:[%s68_s0 + $0x1] sm:$0xff]  ;;  %v10_v12 = vld [vmem:[%s68_s0 + $0x9] sm:$0x1] }
   0x2   :  { %v15_v2 = vmul.f32 %v41_v0, %v9_v1 }
   0x4   :  { %v16_v3 = vmul.f32 0.5, %v15_v2 }
   0x6   :  { %42 = vtanh.f32 %v16_v3 }
  0x13   :  { %v43_v4 = vpop.eup %42 }
  0x14   :  { %v18_v5 = vadd.f32 1.0, %v43_v4 }
  0x16   :  { %v19_v6 = vmul.f32 0.5, %v18_v5 }
  0x18   :  { %v20_v7 = vrot.slane %v19_v6, 4 }
  0x1a   :  { %v21_v8 = vadd.f32 %v20_v7, %v19_v6 }
  0x1c   :  { %v22_v9 = vrot.slane %v21_v8, 2 }
  0x1e   :  { %v23_v10 = vadd.f32 %v22_v9, %v21_v8 }
  0x20   :  { %v24_v11 = vrot.slane %v23_v10, 1 }
  0x22   :  { %v25_v13 = vadd.f32 %v24_v11, %v23_v10 }
  0x24   :  { %v26_v14 = vadd.f32 %v25_v13, %v10_v12 }
  0x26   :  { %v28_v15 = vsel %vm27_vm0, %v26_v14, 0.0 }
  0x27   :  { %29 = vadd.xlane.f32.xlu0 %v28_v15 }
  0xb0   :  { %v30_v16 = vpop.xlane.xlu0 %29 }
  0xb1   :  { %44 = vrcp.f32 %v30_v16 }
  0xbe   :  { %v45_v17 = vpop.eup %44 }
  0xbf   :  { %v32_v18 = vmul.f32 %v45_v17, %v30_v16 }
  0xc1   :  { %v33_v19 = vsub.f32 2.0, %v32_v18 }
  0xc3   :  { %v34_v20 = vmul.f32 %v45_v17, %v33_v19 }
  0xc5   :  { %v35_v21 = vmul.f32 %v34_v20, %v26_v14 }
  0xc7   :  { %36 = vst [vmem:[%s69_s1] sm:$0x1] %v35_v21 }

</bundles_post_ra>
